<compile_context>
chip_gen: v5e
topology: v5e:2x2
jax: 0.10.0
libtpu: 0.0.40
codegen_flags: <defaults>
</compile_context>

<pallas_src>
import functools
import math

import jax
import jax.numpy as jnp
from jax.experimental import pallas as pl
from jax.experimental.pallas import tpu as pltpu


def _round_up(a: int, b: int) -> int:
    return ((a + b - 1) // b) * b


def _l2_normalize(v):
    # matches F.normalize(p=2, dim=1, eps=1e-12): v / max(||v||, 1e-12)
    norm = jnp.sqrt(jnp.sum(v * v, axis=-1, keepdims=True))
    return v / jnp.maximum(norm, 1e-12)


def _arcface_kernel(x_ref, w_ref, lbl_ref, bias_ref, loss_ref,
                    m_sc, l_sc, tgt_sc, *, s, cos_m, sin_m, th, mm):
    ci = pl.program_id(1)
    nc = pl.num_programs(1)

    @pl.when(ci == 0)
    def _():
        m_sc[...] = jnp.full_like(m_sc, -jnp.inf)
        l_sc[...] = jnp.zeros_like(l_sc)
        tgt_sc[...] = jnp.zeros_like(tgt_sc)

    # Pre-normalized bf16 operands feed the MXU directly; f32 accumulation.
    # Contract on the last (lane) dim of both operands -> no transpose.
    cosine = jax.lax.dot_general(
        x_ref[...], w_ref[...],
        dimension_numbers=(((1,), (1,)), ((), ())),
        preferred_element_type=jnp.float32)              # (tb, tc) f32

    tb, tc = cosine.shape
    # Local column index within this class tile (no full-tile +ci*tc add).
    col = jax.lax.broadcasted_iota(jnp.int32, (tb, tc), 1)
    lbl_local = lbl_ref[...] - ci * tc                   # (tb, 1)
    mask = col == lbl_local                              # (tb, tc) target mask
    in_tile = (lbl_local >= 0) & (lbl_local < tc)        # (tb, 1) row-has-target

    # Margin math only on the per-row target cosine (tb values, not (tb, tc)).
    tgt_cos = jnp.sum(jnp.where(mask, cosine, 0.0), axis=-1, keepdims=True)
    sine = jnp.sqrt(jnp.maximum(1.0 - tgt_cos * tgt_cos, 0.0))
    phi = tgt_cos * cos_m - sine * sin_m
    phi = jnp.where(tgt_cos > th, phi, tgt_cos - mm)

    # Swap the target column's cosine for phi, scale, and add the padded-column
    # bias (0 for real classes, -1e30 for padding) streamed from the wrapper.
    logits = (cosine + jnp.where(mask, phi - tgt_cos, 0.0)) * s + bias_ref[...]

    # Online log-sum-exp across class tiles.
    m_prev = m_sc[...]
    m_new = jnp.maximum(m_prev, jnp.max(logits, axis=-1, keepdims=True))
    alpha = jnp.exp(m_prev - m_new)
    l_sc[...] = alpha * l_sc[...] + jnp.sum(jnp.exp(logits - m_new), axis=-1,
                                            keepdims=True)
    m_sc[...] = m_new
    # Target logit of this tile is exactly phi*s; per-row gate, no full reduce.
    tgt_sc[...] = tgt_sc[...] + jnp.where(in_tile, phi * s, 0.0)

    @pl.when(ci == nc - 1)
    def _():
        # per-row cross entropy: logsumexp(logits) - target_logit
        loss_ref[...] = (m_sc[...] + jnp.log(l_sc[...])) - tgt_sc[...]


def arcface_loss(x, weight, label, *, s=30.0, m=0.5, tile_b=None, tile_c=None):
    """ArcFace loss. x: (B, D) f32, weight: (C, D) f32, label: (B,) int."""
    B, D = x.shape
    C, D2 = weight.shape
    assert D == D2

    # ---- hoist F.normalize out of the kernel (f32 math), stream bf16 --------
    xn = _l2_normalize(x.astype(jnp.float32)).astype(jnp.bfloat16)
    wn = _l2_normalize(weight.astype(jnp.float32)).astype(jnp.bfloat16)

    # ---- tile selection / padding -------------------------------------------
    if tile_c is None:
        tile_c = min(512, _round_up(C, 128))
        # Keep the double-buffered bf16 W block modest (v7x VMEM is 64 MiB).
        while tile_c > 128 and 2 * tile_c * D * 2 > 8 * 1024 * 1024:
            tile_c //= 2
    C_pad = _round_up(C, tile_c)

    if tile_b is None:
        b8 = _round_up(B, 8)
        tile_b = min(256, b8)
        # Ensure >= 2 "parallel" batch tiles when B allows it (keeps v7x's
        # second TensorCore busy; also halves per-pass W working set).
        if b8 // tile_b < 2 and b8 >= 16:
            tile_b = _round_up((b8 + 1) // 2, 8)
    B_pad = _round_up(B, tile_b)

    if B_pad != B:
        xn = jnp.pad(xn, ((0, B_pad - B), (0, 0)))
        label = jnp.pad(label, (0, B_pad - B))
    if C_pad != C:
        wn = jnp.pad(wn, ((0, C_pad - C), (0, 0)))

    lbl2d = label.astype(jnp.int32).reshape(B_pad, 1)
    # Additive bias column: 0 for real classes, -1e30 for padded classes.
    col_bias = jnp.where(jnp.arange(C_pad) < C, 0.0,
                         -1e30).astype(jnp.float32).reshape(1, C_pad)

    cos_m = math.cos(m)
    sin_m = math.sin(m)
    th = math.cos(math.pi - m)
    mm = math.sin(math.pi - m) * m

    kernel = functools.partial(
        _arcface_kernel, s=float(s), cos_m=cos_m, sin_m=sin_m, th=th, mm=mm)

    n_b = B_pad // tile_b
    n_c = C_pad // tile_c
    grid = (n_b, n_c)

    # VMEM budget derived from the actual block sizes (inputs double-buffered,
    # plus f32 (tb, tc) temporaries headroom), clamped sensibly per-chip.
    vmem_bytes = (2 * (tile_b * D * 2 + tile_c * D * 2)      # bf16 x / W blocks
                  + 2 * (tile_b * 4 + tile_c * 4 + tile_b * 4)
                  + 3 * tile_b * 4                           # scratch
                  + 8 * tile_b * tile_c * 4)                 # f32 temporaries
    vmem_limit = int(min(64 * 1024 * 1024,
                         max(32 * 1024 * 1024, 2 * vmem_bytes)))

    cost = pl.CostEstimate(
        flops=2 * B_pad * C_pad * D,
        transcendentals=B_pad * C_pad + 2 * B_pad * n_c,
        bytes_accessed=(n_b * C_pad * D * 2      # W re-streamed per batch tile
                        + B_pad * D * 2          # x
                        + B_pad * 4 + C_pad * 4  # labels + bias column
                        + B_pad * 4),            # per-row loss out
    )

    per_row = pl.pallas_call(
        kernel,
        out_shape=jax.ShapeDtypeStruct((B_pad, 1), jnp.float32),
        grid_spec=pltpu.PrefetchScalarGridSpec(
            num_scalar_prefetch=0,
            grid=grid,
            in_specs=[
                pl.BlockSpec((tile_b, D), lambda b, c: (b, 0)),   # x (bf16)
                pl.BlockSpec((tile_c, D), lambda b, c: (c, 0)),   # W tile (bf16)
                pl.BlockSpec((tile_b, 1), lambda b, c: (b, 0)),   # label column
                pl.BlockSpec((1, tile_c), lambda b, c: (0, c)),   # class-pad bias
            ],
            out_specs=pl.BlockSpec((tile_b, 1), lambda b, c: (b, 0)),
            scratch_shapes=[
                pltpu.VMEM((tile_b, 1), jnp.float32),   # running max
                pltpu.VMEM((tile_b, 1), jnp.float32),   # running sum-exp
                pltpu.VMEM((tile_b, 1), jnp.float32),   # target logit
            ],
        ),
        compiler_params=pltpu.CompilerParams(
            dimension_semantics=("parallel", "arbitrary"),
            vmem_limit_bytes=vmem_limit,
        ),
        cost_estimate=cost,
    )(xn, wn, lbl2d, col_bias)

    # Drop padded batch rows and take the mean (cheap plain-JAX glue).
    return jnp.mean(per_row[:B, 0])


if __name__ == "__main__":
    B, D, C = 8, 32, 16  # batch, in_features, out_features (classes)

    key = jax.random.PRNGKey(0)
    kx, kw, kl = jax.random.split(key, 3)

    x = jax.random.normal(kx, (B, D), dtype=jnp.float32)

    # nn.init.xavier_uniform_ for weight of shape (out_features, in_features)
    limit = math.sqrt(6.0 / (C + D))
    weight = jax.random.uniform(kw, (C, D), dtype=jnp.float32,
                                minval=-limit, maxval=limit)

    label = jax.random.randint(kl, (B,), 0, C, dtype=jnp.int32)

    loss = arcface_loss(x, weight, label, s=30.0, m=0.5)
    jax.block_until_ready(loss)
    print("KERNEL_OK")
</pallas_src>

<mosaic_0001>
module attributes {stable_mosaic.version = 11 : i64} {
  func.func @_arcface_kernel(%arg0: i32, %arg1: i32, %arg2: memref<8x32xbf16, #tpu.memory_space<vmem>>, %arg3: memref<128x32xbf16, #tpu.memory_space<vmem>>, %arg4: memref<8x1xi32, #tpu.memory_space<vmem>>, %arg5: memref<1x128xf32, #tpu.memory_space<vmem>>, %arg6: memref<8x1xf32, #tpu.memory_space<vmem>>, %arg7: memref<8x1xf32, #tpu.memory_space<vmem>>, %arg8: memref<8x1xf32, #tpu.memory_space<vmem>>, %arg9: memref<8x1xf32, #tpu.memory_space<vmem>>) attributes {dimension_semantics = [#tpu.dimension_semantics<parallel>, #tpu.dimension_semantics<arbitrary>], iteration_bounds = array<i64: 1, 1>, scalar_prefetch = 0 : i64, scratch_operands = 3 : i64, tpu.core_type = #tpu.core_type<tc>, window_params = [{transform_indices = @transform_0, window_bounds = array<i64: 8, 32>}, {transform_indices = @transform_1, window_bounds = array<i64: 128, 32>}, {transform_indices = @transform_2, window_bounds = array<i64: 8, 1>}, {transform_indices = @transform_3, window_bounds = array<i64: 1, 128>}, {transform_indices = @transform_4, window_bounds = array<i64: 8, 1>}]} {
    %c0_i32 = arith.constant 0 : i32
    %0 = arith.cmpi eq, %arg1, %c0_i32 : i32
    %1 = arith.extui %0 : i1 to i32
    %c0_i32_0 = arith.constant 0 : i32
    %2 = arith.cmpi ne, %1, %c0_i32_0 : i32
    scf.if %2 {
      %cst_38 = arith.constant 0xFF800000 : f32
      %75 = vector.broadcast %cst_38 : f32 to vector<8x1xf32>
      %c0_39 = arith.constant 0 : index
      %c0_40 = arith.constant 0 : index
      %76 = vector.load %arg7[%c0_39, %c0_40] : memref<8x1xf32, #tpu.memory_space<vmem>>, vector<8x1xf32>
      tpu.vector_store %arg7[%c0_39, %c0_40], %75 {strides = array<i32>} : memref<8x1xf32, #tpu.memory_space<vmem>>, vector<8x1xf32>,
      %cst_41 = arith.constant 0.000000e+00 : f32
      %77 = vector.broadcast %cst_41 : f32 to vector<8x1xf32>
      %c0_42 = arith.constant 0 : index
      %c0_43 = arith.constant 0 : index
      %78 = vector.load %arg8[%c0_42, %c0_43] : memref<8x1xf32, #tpu.memory_space<vmem>>, vector<8x1xf32>
      tpu.vector_store %arg8[%c0_42, %c0_43], %77 {strides = array<i32>} : memref<8x1xf32, #tpu.memory_space<vmem>>, vector<8x1xf32>,
      %cst_44 = arith.constant 0.000000e+00 : f32
      %79 = vector.broadcast %cst_44 : f32 to vector<8x1xf32>
      %c0_45 = arith.constant 0 : index
      %c0_46 = arith.constant 0 : index
      %80 = vector.load %arg9[%c0_45, %c0_46] : memref<8x1xf32, #tpu.memory_space<vmem>>, vector<8x1xf32>
      tpu.vector_store %arg9[%c0_45, %c0_46], %79 {strides = array<i32>} : memref<8x1xf32, #tpu.memory_space<vmem>>, vector<8x1xf32>,
    } else {
    }
    %c0 = arith.constant 0 : index
    %c0_1 = arith.constant 0 : index
    %3 = vector.load %arg2[%c0, %c0_1] : memref<8x32xbf16, #tpu.memory_space<vmem>>, vector<8x32xbf16>
    %c0_2 = arith.constant 0 : index
    %c0_3 = arith.constant 0 : index
    %4 = vector.load %arg3[%c0_2, %c0_3] : memref<128x32xbf16, #tpu.memory_space<vmem>>, vector<128x32xbf16>
    %cst = arith.constant dense<0.000000e+00> : vector<8x128xf32>
    %5 = tpu.matmul %3, %4, %cst {dimension_numbers = #tpu.dot_dimension_numbers<[1], [1], [0], [0], [0, 0, 1, 0], [], []>} : vector<8x32xbf16>, vector<128x32xbf16>, vector<8x128xf32> -> vector<8x128xf32>
    %6 = tpu.iota {dimensions = array<i32: 1>} : vector<8x128xi32>
    %c0_4 = arith.constant 0 : index
    %c0_5 = arith.constant 0 : index
    %7 = vector.load %arg4[%c0_4, %c0_5] : memref<8x1xi32, #tpu.memory_space<vmem>>, vector<8x1xi32>
    %c128_i32 = arith.constant 128 : i32
    %8 = arith.muli %arg1, %c128_i32 : i32
    %9 = vector.broadcast %8 : i32 to vector<8x1xi32>
    %10 = arith.subi %7, %9 : vector<8x1xi32>
    %11 = vector.broadcast %10 : vector<8x1xi32> to vector<8x128xi32>
    %12 = arith.cmpi eq, %6, %11 : vector<8x128xi32>
    %c0_i32_6 = arith.constant 0 : i32
    %13 = vector.broadcast %c0_i32_6 : i32 to vector<8x1xi32>
    %14 = arith.cmpi sge, %10, %13 : vector<8x1xi32>
    %c128_i32_7 = arith.constant 128 : i32
    %15 = vector.broadcast %c128_i32_7 : i32 to vector<8x1xi32>
    %16 = arith.cmpi slt, %10, %15 : vector<8x1xi32>
    %17 = arith.andi %14, %16 : vector<8x1xi1>
    %cst_8 = arith.constant 0.000000e+00 : f32
    %18 = vector.broadcast %cst_8 : f32 to vector<8x128xf32>
    %19 = arith.select %12, %5, %18 : vector<8x128xi1>, vector<8x128xf32>
    %cst_9 = arith.constant dense<0.000000e+00> : vector<8xf32>
    %20 = vector.multi_reduction <add>, %19, %cst_9 [1] : vector<8x128xf32> to vector<8xf32>
    %21 = vector.shape_cast %20 : vector<8xf32> to vector<8x1xf32>
    %22 = arith.mulf %21, %21 : vector<8x1xf32>
    %cst_10 = arith.constant 1.000000e+00 : f32
    %23 = vector.broadcast %cst_10 : f32 to vector<8x1xf32>
    %24 = arith.subf %23, %22 : vector<8x1xf32>
    %cst_11 = arith.constant 0.000000e+00 : f32
    %25 = vector.broadcast %cst_11 : f32 to vector<8x1xf32>
    %26 = arith.maximumf %24, %25 : vector<8x1xf32>
    %27 = math.sqrt %26 : vector<8x1xf32>
    %cst_12 = arith.constant 0.87758255 : f32
    %28 = vector.broadcast %cst_12 : f32 to vector<8x1xf32>
    %29 = arith.mulf %21, %28 : vector<8x1xf32>
    %cst_13 = arith.constant 0.47942555 : f32
    %30 = vector.broadcast %cst_13 : f32 to vector<8x1xf32>
    %31 = arith.mulf %27, %30 : vector<8x1xf32>
    %32 = arith.subf %29, %31 : vector<8x1xf32>
    %cst_14 = arith.constant -0.87758255 : f32
    %33 = vector.broadcast %cst_14 : f32 to vector<8x1xf32>
    %34 = arith.cmpf ogt, %21, %33 : vector<8x1xf32>
    %cst_15 = arith.constant 0.239712775 : f32
    %35 = vector.broadcast %cst_15 : f32 to vector<8x1xf32>
    %36 = arith.subf %21, %35 : vector<8x1xf32>
    %37 = arith.select %34, %32, %36 : vector<8x1xi1>, vector<8x1xf32>
    %38 = arith.subf %37, %21 : vector<8x1xf32>
    %cst_16 = arith.constant 0.000000e+00 : f32
    %39 = vector.shape_cast %38 : vector<8x1xf32> to vector<8x1xf32>
    %40 = vector.broadcast %39 : vector<8x1xf32> to vector<8x128xf32>
    %41 = vector.broadcast %cst_16 : f32 to vector<8x128xf32>
    %42 = arith.select %12, %40, %41 : vector<8x128xi1>, vector<8x128xf32>
    %43 = arith.addf %5, %42 : vector<8x128xf32>
    %cst_17 = arith.constant 3.000000e+01 : f32
    %44 = vector.broadcast %cst_17 : f32 to vector<8x128xf32>
    %45 = arith.mulf %43, %44 : vector<8x128xf32>
    %c0_18 = arith.constant 0 : index
    %c0_19 = arith.constant 0 : index
    %46 = vector.load %arg5[%c0_18, %c0_19] : memref<1x128xf32, #tpu.memory_space<vmem>>, vector<1x128xf32>
    %47 = vector.broadcast %46 : vector<1x128xf32> to vector<8x128xf32>
    %48 = arith.addf %45, %47 : vector<8x128xf32>
    %c0_20 = arith.constant 0 : index
    %c0_21 = arith.constant 0 : index
    %49 = vector.load %arg7[%c0_20, %c0_21] : memref<8x1xf32, #tpu.memory_space<vmem>>, vector<8x1xf32>
    %cst_22 = arith.constant dense<0xFF800000> : vector<8xf32>
    %50 = vector.multi_reduction <maximumf>, %48, %cst_22 [1] : vector<8x128xf32> to vector<8xf32>
    %51 = vector.shape_cast %50 : vector<8xf32> to vector<8x1xf32>
    %52 = arith.maximumf %49, %51 : vector<8x1xf32>
    %53 = arith.subf %49, %52 : vector<8x1xf32>
    %54 = math.exp %53 : vector<8x1xf32>
    %c0_23 = arith.constant 0 : index
    %c0_24 = arith.constant 0 : index
    %55 = vector.load %arg8[%c0_23, %c0_24] : memref<8x1xf32, #tpu.memory_space<vmem>>, vector<8x1xf32>
    %56 = arith.mulf %54, %55 : vector<8x1xf32>
    %57 = vector.broadcast %52 : vector<8x1xf32> to vector<8x128xf32>
    %58 = arith.subf %48, %57 : vector<8x128xf32>
    %59 = math.exp %58 : vector<8x128xf32>
    %cst_25 = arith.constant dense<0.000000e+00> : vector<8xf32>
    %60 = vector.multi_reduction <add>, %59, %cst_25 [1] : vector<8x128xf32> to vector<8xf32>
    %61 = vector.shape_cast %60 : vector<8xf32> to vector<8x1xf32>
    %62 = arith.addf %56, %61 : vector<8x1xf32>
    %c0_26 = arith.constant 0 : index
    %c0_27 = arith.constant 0 : index
    %63 = vector.load %arg8[%c0_26, %c0_27] : memref<8x1xf32, #tpu.memory_space<vmem>>, vector<8x1xf32>
    tpu.vector_store %arg8[%c0_26, %c0_27], %62 {strides = array<i32>} : memref<8x1xf32, #tpu.memory_space<vmem>>, vector<8x1xf32>,
    %c0_28 = arith.constant 0 : index
    %c0_29 = arith.constant 0 : index
    %64 = vector.load %arg7[%c0_28, %c0_29] : memref<8x1xf32, #tpu.memory_space<vmem>>, vector<8x1xf32>
    tpu.vector_store %arg7[%c0_28, %c0_29], %52 {strides = array<i32>} : memref<8x1xf32, #tpu.memory_space<vmem>>, vector<8x1xf32>,
    %c0_30 = arith.constant 0 : index
    %c0_31 = arith.constant 0 : index
    %65 = vector.load %arg9[%c0_30, %c0_31] : memref<8x1xf32, #tpu.memory_space<vmem>>, vector<8x1xf32>
    %cst_32 = arith.constant 3.000000e+01 : f32
    %66 = vector.broadcast %cst_32 : f32 to vector<8x1xf32>
    %67 = arith.mulf %37, %66 : vector<8x1xf32>
    %cst_33 = arith.constant 0.000000e+00 : f32
    %68 = vector.broadcast %cst_33 : f32 to vector<8x1xf32>
    %69 = arith.select %17, %67, %68 : vector<8x1xi1>, vector<8x1xf32>
    %70 = arith.addf %65, %69 : vector<8x1xf32>
    %c0_34 = arith.constant 0 : index
    %c0_35 = arith.constant 0 : index
    %71 = vector.load %arg9[%c0_34, %c0_35] : memref<8x1xf32, #tpu.memory_space<vmem>>, vector<8x1xf32>
    tpu.vector_store %arg9[%c0_34, %c0_35], %70 {strides = array<i32>} : memref<8x1xf32, #tpu.memory_space<vmem>>, vector<8x1xf32>,
    %c0_i32_36 = arith.constant 0 : i32
    %72 = arith.cmpi eq, %arg1, %c0_i32_36 : i32
    %73 = arith.extui %72 : i1 to i32
    %c0_i32_37 = arith.constant 0 : i32
    %74 = arith.cmpi ne, %73, %c0_i32_37 : i32
    scf.if %74 {
      %c0_38 = arith.constant 0 : index
      %c0_39 = arith.constant 0 : index
      %75 = vector.load %arg7[%c0_38, %c0_39] : memref<8x1xf32, #tpu.memory_space<vmem>>, vector<8x1xf32>
      %c0_40 = arith.constant 0 : index
      %c0_41 = arith.constant 0 : index
      %76 = vector.load %arg8[%c0_40, %c0_41] : memref<8x1xf32, #tpu.memory_space<vmem>>, vector<8x1xf32>
      %77 = math.log %76 : vector<8x1xf32>
      %78 = arith.addf %75, %77 : vector<8x1xf32>
      %c0_42 = arith.constant 0 : index
      %c0_43 = arith.constant 0 : index
      %79 = vector.load %arg9[%c0_42, %c0_43] : memref<8x1xf32, #tpu.memory_space<vmem>>, vector<8x1xf32>
      %80 = arith.subf %78, %79 : vector<8x1xf32>
      %c0_44 = arith.constant 0 : index
      %c0_45 = arith.constant 0 : index
      %81 = vector.load %arg6[%c0_44, %c0_45] : memref<8x1xf32, #tpu.memory_space<vmem>>, vector<8x1xf32>
      tpu.vector_store %arg6[%c0_44, %c0_45], %80 {strides = array<i32>} : memref<8x1xf32, #tpu.memory_space<vmem>>, vector<8x1xf32>,
    } else {
    }
    return
  }
  func.func @transform_0(%arg0: i32, %arg1: i32) -> (i32, i32) {
    %c0_i32 = arith.constant 0 : i32
    %c0_i32_0 = arith.constant 0 : i32
    return %arg0, %c0_i32 : i32, i32
  }
  func.func @transform_1(%arg0: i32, %arg1: i32) -> (i32, i32) {
    %c0_i32 = arith.constant 0 : i32
    %c0_i32_0 = arith.constant 0 : i32
    return %arg1, %c0_i32 : i32, i32
  }
  func.func @transform_2(%arg0: i32, %arg1: i32) -> (i32, i32) {
    %c0_i32 = arith.constant 0 : i32
    %c0_i32_0 = arith.constant 0 : i32
    return %arg0, %c0_i32 : i32, i32
  }
  func.func @transform_3(%arg0: i32, %arg1: i32) -> (i32, i32) {
    %c0_i32 = arith.constant 0 : i32
    %c0_i32_0 = arith.constant 0 : i32
    return %c0_i32, %arg1 : i32, i32
  }
  func.func @transform_4(%arg0: i32, %arg1: i32) -> (i32, i32) {
    %c0_i32 = arith.constant 0 : i32
    %c0_i32_0 = arith.constant 0 : i32
    return %arg0, %c0_i32 : i32, i32
  }
}

</mosaic_0001>

<bundles_post_ra>
// kernel: tpu_custom_call.1
= control target key start
LH: loop header
LB: loop body
LE: loop exit
PB: predicated region body
PF: predicated region fallthrough
CT: control target
= control target key end

     0   :  { %vm82_vm0 = vcmask 261120   ;;  %v268_v11 = vmov 0   ;;  %vm21_vm1 = vcmask 7168   ;;  %v269_v19 = vmov 0.0   ;;  %s350_s1 = inlined_call_operand.vmem [shape: bf16[128,32], index: 1, kind: input, shape index: {}]   ;;  %s351_s2 = inlined_call_operand.vmem [shape: s32[8,1], index: 2, kind: input, shape index: {}]   ;;  %s352_s0 = inlined_call_operand.vmem [shape: bf16[8,32], index: 0, kind: input, shape index: {}]   ;;  %s353_s3 = inlined_call_operand.vmem [shape: f32[1,128], index: 3, kind: input, shape index: {}]   ;;  %s354_s4 = inlined_call_operand.vmem [shape: f32[8,1], index: 4, kind: output, shape index: {}]  }
   0x1   :  { %v253_v0 = vld [vmem:[%s350_s1 + $0x38] sm:$0xff]  ;;  %v252_v2 = vld [vmem:[%s350_s1 + $0x30] sm:$0xff]  ;;  %v251_v4 = vld [vmem:[%s350_s1 + $0x28] sm:$0xff]  ;;  %257 = vset.pattern.permute.xlu0 %v268_v11  ;;  %258 = vset.pattern.permute.xlu1 %v268_v11  ;;  %24 = vst.msk [vmem:[#allocation4] sm:$0xff] %vm21_vm1, %v269_v19  ;;  %v123_v20 = vlaneseq  ;;  %v270_v30 = vmov -inf  }
   0x2   :  { %v108_v1 = vsel %vm82_vm0, %v253_v0, 0  ;;  %v105_v3 = vsel %vm82_vm0, %v252_v2, 0  ;;  %v102_v5 = vsel %vm82_vm0, %v251_v4, 0  ;;  %v250_v6 = vld [vmem:[%s350_s1 + $0x20] sm:$0xff]  ;;  %v249_v8 = vld [vmem:[%s350_s1 + $0x18] sm:$0xff]  ;;  %v248_v12 = vld [vmem:[%s350_s1 + $0x10] sm:$0xff] }
   0x3   :  { %110 = vmatpush.bf16.xpose.msra.mxu0 %v108_v1  ;;  %v99_v7 = vsel %vm82_vm0, %v250_v6, 0  ;;  %v96_v9 = vsel %vm82_vm0, %v249_v8, 0  ;;  %v125_v10 = vld [vmem:[%s351_s2] sm:$0xff]  ;;  %v93_v13 = vsel %vm82_vm0, %v248_v12, 0  ;;  %v247_v14 = vld [vmem:[%s350_s1 + $0x8] sm:$0xff]  ;;  %23 = vst.msk [vmem:[#allocation3] sm:$0xff] %vm21_vm1, %v269_v19 }
   0x4   :  { %130 = vperm.xlu0 %257, %v125_v10   ;;  %v90_v15 = vsel %vm82_vm0, %v247_v14, 0  ;;  %v246_v16 = vld [vmem:[%s350_s1] sm:$0xff]  ;;  %v124_v21 = vand.u32 127, %v123_v20  ;;  %22 = vst.msk [vmem:[#allocation2] sm:$0xff] %vm21_vm1, %v270_v30  ;;  %vm133_vm5 = vcmp.ge.s32.totalorder %v125_v10, 0  ;;  %vm134_vm6 = vcmp.lt.s32.totalorder %v125_v10, 128 }
   0x5   :  { %v87_v17 = vsel %vm82_vm0, %v246_v16, 0  ;;  %v25_v18 = vld [vmem:[%s352_s0] sm:$0xf]  ;;  %vm135_vm8 = vmand %vm133_vm5, %vm134_vm6 }
   0x6   :  { %v259_v53 = vld [vmem:[%s353_s3] ss:$0 sm:$0xff] }
   0x8   :  { %v192_v46 = vld [vmem:[#allocation4] sm:$0xff] }
   0xa   :  { %v176_v2 = vld [vmem:[#allocation3] sm:$0xff] }
   0xb   :  { %111 = vmatpush.bf16.xpose.msra.mxu0 %v105_v3  ;;  %v169_v56 = vld [vmem:[#allocation2] sm:$0xff] }
  0x13   :  { %112 = vmatpush.bf16.xpose.msra.mxu0 %v102_v5 }
  0x1b   :  { %113 = vmatpush.bf16.xpose.msra.mxu0 %v99_v7 }
  0x23   :  { %114 = vmatpush.bf16.xpose.msra.mxu0 %v96_v9 }
  0x2b   :  { %115 = vmatpush.bf16.xpose.msra.mxu0 %v93_v13 }
  0x33   :  { %116 = vmatpush.bf16.xpose.msra.mxu0 %v90_v15 }
  0x3b   :  { %117 = vmatpush.bf16.xpose.msra.mxu0 %v87_v17 }
  0x42   :  { %244 = vmatmul.msk.bf16.vlgmr.msra.gmra.mxu0 %vm82_vm0, %v25_v18 }
  0x76   :  { %v131_v22 = vpop.permute.xlu0 %130 }
  0x77   :  { %vm132_vm2 = vcmp.eq.s32.totalorder %v124_v21, %v131_v22 }
  0xbf   :  { %v119_v23 = vpop.f32.mrf.mxu0 }
  0xc0   :  { %v136_v24 = vsel %vm132_vm2, %v119_v23, 0.0 }
  0xc1   :  { %137 = vadd.xlane.f32.xlu0 %v136_v24 }
  0xc7   :  { %v121_v25 = vpop.f32.mrf.mxu0 }
 0x134   :  { %v138_v26 = vpop.xlane.xlu0 %137 }
 0x135   :  { %v139_v27 = vmul.f32 %v138_v26, %v138_v26  ;;  %v154_v41 = vmul.f32 0.87758255, %v138_v26  ;;  %v245_v44 = vadd.f32 -0.23971277, %v138_v26  ;;  %vm157_vm7 = vcmp.gt.f32.partialorder %v138_v26, -0.87758255 }
 0x137   :  { %v140_v28 = vsub.f32 1.0, %v139_v27 }
 0x139   :  { %v141_v29 = vmax.f32 %v140_v28, 0.0 }
 0x13b   :  { %260 = vrsqrt.f32 %v141_v29  ;;  %vm149_vm3 = vcmp.eq.f32.partialorder %v141_v29, inf  ;;  %v152_v38 = vand.u32 2147483648, %v141_v29  ;;  %vm151_vm4 = vcmp.eq.f32.partialorder %v141_v29, 0.0 }
 0x141   :  { %v261_v31 = vpop.eup %260 }
 0x142   :  { %v143_v32 = vmul.f32 %v261_v31, %v141_v29 }
 0x144   :  { %v144_v33 = vmul.f32 %v261_v31, %v143_v32 }
 0x146   :  { %v145_v34 = vmul.f32 0.5, %v144_v33 }
 0x148   :  { %v146_v35 = vsub.f32 1.5, %v145_v34 }
 0x14a   :  { %v147_v36 = vmul.f32 %v261_v31, %v146_v35 }
 0x14c   :  { %v148_v37 = vmul.f32 %v147_v36, %v141_v29 }
 0x14e   :  { %v150_v39 = vsel %vm149_vm3, %v141_v29, %v148_v37 }
 0x14f   :  { %v153_v40 = vsel %vm151_vm4, %v152_v38, %v150_v39 }
 0x150   :  { %v155_v42 = vmul.f32 0.47942555, %v153_v40 }
 0x152   :  { %v156_v43 = vsub.f32 %v154_v41, %v155_v42 }
 0x154   :  { %v159_v45 = vsel %vm157_vm7, %v156_v43, %v245_v44 }
 0x155   :  { %v160_v47 = vsub.f32 %v159_v45, %v138_v26  ;;  %v193_v48 = vmul.f32 30.0, %v159_v45 }
 0x157   :  { %v194_v49 = vsel %vm135_vm8, %v193_v48, 0.0  ;;  %v161_v50 = vsel %vm132_vm2, %v160_v47, 0.0 }
 0x158   :  { %v195_v51 = vadd.f32 %v194_v49, %v192_v46  ;;  %v162_v52 = vadd.f32 %v161_v50, %v119_v23 }
 0x15a   :  { %196 = vst.msk [vmem:[#allocation4] sm:$0xff] %vm21_vm1, %v195_v51  ;;  %v163_v54 = vmul.f32 30.0, %v162_v52 }
 0x15c   :  { %v168_v55 = vadd.f32 %v259_v53, %v163_v54 }
 0x15e   :  { %170 = vmax.xlane.f32.xlu1 %v168_v55 }
 0x161   :  { %v205_v11 = vld [vmem:[#allocation4] sm:$0xff] }
 0x1d1   :  { %v171_v57 = vpop.xlane.xlu1 %170 }
 0x1d2   :  { %v172_v58 = vmax.f32 %v169_v56, %v171_v57 }
 0x1d4   :  { %v173_v59 = vsub.f32 %v169_v56, %v172_v58  ;;  %191 = vst.msk [vmem:[#allocation2] sm:$0xff] %vm21_vm1, %v172_v58  ;;  %180 = vperm.xlu1 %258, %v172_v58  }
 0x1d6   :  { %v174_v0 = vmul.f32 1.442695, %v173_v59 }
 0x1db   :  { %v200_v9 = vld [vmem:[#allocation2] sm:$0xff] }
 0x246   :  { %v181_v60 = vpop.permute.xlu1 %180 }
 0x247   :  { %v183_v61 = vsub.f32 %v168_v55, %v181_v60 }
 0x249   :  { %v184_v62 = vmul.f32 1.442695, %v183_v61 }
 0x24b   :  { %262 = vpow2.f32 %v184_v62 }
 0x24c   :  { %264 = vpow2.f32 %v174_v0 }
 0x251   :  { %v263_v63 = vpop.eup %262 }
 0x252   :  { %186 = vadd.xlane.f32.xlu2 %v263_v63  ;;  %v265_v1 = vpop.eup %264 }
 0x253   :  { %v177_v3 = vmul.f32 %v265_v1, %v176_v2 }
 0x2c5   :  { %v187_v4 = vpop.xlane.xlu2 %186 }
 0x2c6   :  { %v188_v5 = vadd.f32 %v187_v4, %v177_v3 }
 0x2c8   :  { %190 = vst.msk [vmem:[#allocation3] sm:$0xff] %vm21_vm1, %v188_v5 }
 0x2cf   :  { %v201_v6 = vld [vmem:[#allocation3] sm:$0xff] }
 0x2d0   :  { %266 = vlog2.f32 %v201_v6 }
 0x2d6   :  { %v267_v7 = vpop.eup %266 }
 0x2d7   :  { %v203_v8 = vmul.f32 0.6931472, %v267_v7 }
 0x2d9   :  { %v204_v10 = vadd.f32 %v203_v8, %v200_v9 }
 0x2db   :  { %v206_v12 = vsub.f32 %v204_v10, %v205_v11 }
 0x2dd   :  { %207 = vst.msk [vmem:[%s354_s4] sm:$0xff] %vm21_vm1, %v206_v12 }

</bundles_post_ra>
